<compile_context>
chip_gen: v6e
topology: v6e:2x2x1
jax: 0.10.0
libtpu: 0.0.40
codegen_flags: <defaults>
</compile_context>

<pallas_src>
import functools

import jax
import jax.numpy as jnp
from jax import lax
from jax.experimental import pallas as pl
from jax.experimental.pallas import tpu as pltpu


def _round_up(a, b):
    return ((a + b - 1) // b) * b


# ----------------------------- Pallas kernels ------------------------------ #

def _conv_bias_kernel(w_ref, b_ref, p_ref, o_ref):
    # w_ref: (Cout, K)   compute dtype (f32 or bf16), resident across grid
    # b_ref: (Cout, 1)   f32, resident across grid
    # p_ref: (K, TP)     compute dtype, lane-dense column tile of one batch
    # o_ref: (Cout, TP)  compute dtype, full-width (unmasked) stores
    acc = jnp.dot(w_ref[...], p_ref[...], preferred_element_type=jnp.float32)
    o_ref[...] = (acc + b_ref[...]).astype(o_ref.dtype)


def _squash_kernel(sel_ref, selt_ref, x_ref, o_ref, *, approx):
    # sel_ref : (128, ng)  f32 0/1 capsule-selection matrix (resident)
    # selt_ref: (ng, 128)  its transpose (resident)
    # x_ref   : (RT, 128)  compute dtype.  Each 128-lane row holds ng whole
    #                      capsules (dim_caps consecutive lanes each).
    # o_ref   : (RT, 128)  f32.  Zero-padded rows/lanes squash to exactly 0
    #                      (thanks to the +1e-8) and are sliced off outside.
    x = x_ref[...].astype(jnp.float32)
    xsq = x * x
    # Per-capsule ||v||^2 as a lane-segmented sum via a tiny MXU matmul.
    sq = jnp.dot(xsq, sel_ref[...], preferred_element_type=jnp.float32)   # (RT, ng)
    norm = jnp.sqrt(sq)
    # scale = sq / (1 + sq) / (norm + 1e-8)   (same eps placement as PyTorch);
    # one reciprocal of the fused denominator (EUP vrcp when approx=True).
    scale = sq * pl.reciprocal((1.0 + sq) * (norm + 1e-8), approx=approx)
    # Broadcast each capsule's scale back to its dim_caps lanes (MXU).
    scale_full = jnp.dot(scale, selt_ref[...],
                         preferred_element_type=jnp.float32)              # (RT, 128)
    o_ref[...] = (x * scale_full).astype(o_ref.dtype)


# ------------------------------ host wrappers ------------------------------ #

def _im2col(x, kh, kw, stride, padding):
    """x: (B, Cin, H, W) -> patches (B, Cin*kh*kw, Ho*Wo); pure-JAX glue.

    Flattens (Cin, kh, kw) exactly like PyTorch's weight.reshape(Cout, -1).
    """
    B, Cin, H, W = x.shape
    if padding:
        x = jnp.pad(x, ((0, 0), (0, 0), (padding, padding), (padding, padding)))
        H, W = H + 2 * padding, W + 2 * padding
    Ho = (H - kh) // stride + 1
    Wo = (W - kw) // stride + 1
    cols = []
    for i in range(kh):
        for j in range(kw):
            cols.append(x[:, :, i:i + stride * Ho:stride, j:j + stride * Wo:stride])
    patches = jnp.stack(cols, axis=2)                     # (B, Cin, kh*kw, Ho, Wo)
    return patches.reshape(B, Cin * kh * kw, Ho * Wo), Ho, Wo


def primary_capsule_forward(x, weight, bias, *, dim_caps, stride, padding,
                            compute_dtype=jnp.bfloat16):
    """Equivalent of PrimaryCapsule.forward for NCHW x (weight OIHW)."""
    B, Cin, H, W = x.shape
    Cout, _, kh, kw = weight.shape
    strict_f32 = jnp.dtype(compute_dtype) == jnp.dtype(jnp.float32)

    # Cast EARLY so all im2col / pad data movement happens in compute_dtype.
    xc = x.astype(compute_dtype)
    patches, Ho, Wo = _im2col(xc, kh, kw, stride, padding)        # (B, K, P)
    K = Cin * kh * kw
    P = Ho * Wo
    M = Cout * P                                                  # per-batch flat size
    assert M % dim_caps == 0, "Cout*Ho*Wo must be divisible by dim_caps"
    # TODO(synk): the lane-dense squash packing assumes dim_caps divides 128.
    assert 128 % dim_caps == 0

    # ---- Stage 1: conv as per-batch lane-dense matmuls (bias fused). ----
    Ppad = _round_up(P, 128)
    if Ppad % 512 == 0:
        TP = 512
    elif Ppad % 256 == 0:
        TP = 256                     # fills the 256-wide MXU N dim on v6e/v7x
    else:
        TP = 128
    patches = jnp.pad(patches, ((0, 0), (0, 0), (0, Ppad - P)))   # (B, K, Ppad)
    w2d = weight.reshape(Cout, K).astype(compute_dtype)
    b2d = bias.reshape(Cout, 1).astype(jnp.float32)

    conv = pl.pallas_call(
        _conv_bias_kernel,
        out_shape=jax.ShapeDtypeStruct((B, Cout, Ppad), compute_dtype),
        grid_spec=pltpu.PrefetchScalarGridSpec(
            num_scalar_prefetch=0,
            grid=(B, Ppad // TP),
            in_specs=[
                pl.BlockSpec((Cout, K), lambda b, pt: (0, 0)),      # weight, resident
                pl.BlockSpec((Cout, 1), lambda b, pt: (0, 0)),      # bias, resident
                pl.BlockSpec((None, K, TP), lambda b, pt: (b, 0, pt)),
            ],
            out_specs=pl.BlockSpec((None, Cout, TP), lambda b, pt: (b, 0, pt)),
        ),
        compiler_params=pltpu.CompilerParams(
            dimension_semantics=("parallel", "parallel")),
    )(w2d, b2d, patches)

    # ---- Stage 2: lane-dense squash on the capsule-flat layout. ----
    # conv is already per-batch contiguous in PyTorch .view(B,-1,dim) order:
    # flat[b, c*P + p] = conv[b, c, p].  No Cout<->batch transpose needed.
    flat = conv[:, :, :P].reshape(B, M)
    Mpad = _round_up(M, 128)
    flat = jnp.pad(flat, ((0, 0), (0, Mpad - M)))                 # capsule-aligned pad
    rows = B * (Mpad // 128)
    x2d = flat.reshape(rows, 128)

    # Big row tiles (per-grid-step overhead dominates at 128); keep >=2 tiles
    # for v7x's two TensorCores when the problem allows it.
    if rows >= 1024:
        row_tile = 512
    elif rows >= 32:
        row_tile = _round_up(max(rows // 2, 1), 16)
    else:
        row_tile = _round_up(rows, 16)
    rpad = _round_up(rows, row_tile)
    x2d = jnp.pad(x2d, ((0, rpad - rows), (0, 0)))

    # Capsule-selection matrices built ONCE on the host (loop-invariant).
    ng = 128 // dim_caps
    sel = (jnp.arange(128)[:, None] // dim_caps
           == jnp.arange(ng)[None, :]).astype(jnp.float32)        # (128, ng)
    sel_t = sel.T                                                 # (ng, 128)

    out2d = pl.pallas_call(
        functools.partial(_squash_kernel, approx=not strict_f32),
        out_shape=jax.ShapeDtypeStruct((rpad, 128), jnp.float32),
        grid_spec=pltpu.PrefetchScalarGridSpec(
            num_scalar_prefetch=0,
            grid=(rpad // row_tile,),
            in_specs=[
                pl.BlockSpec((128, ng), lambda r: (0, 0)),        # sel, resident
                pl.BlockSpec((ng, 128), lambda r: (0, 0)),        # sel_t, resident
                pl.BlockSpec((row_tile, 128), lambda r: (r, 0)),
            ],
            out_specs=pl.BlockSpec((row_tile, 128), lambda r: (r, 0)),
        ),
        compiler_params=pltpu.CompilerParams(
            dimension_semantics=("parallel",)),
    )(sel, sel_t, x2d)

    caps = out2d[:rows].reshape(B, Mpad)[:, :M].reshape(B, M // dim_caps, dim_caps)
    return caps.astype(x.dtype)


# ------------------------------ reference (JAX) ----------------------------- #

def _reference(x, weight, bias, dim_caps, stride, padding):
    y = lax.conv_general_dilated(
        x, weight, window_strides=(stride, stride),
        padding=[(padding, padding), (padding, padding)],
        dimension_numbers=("NCHW", "OIHW", "NCHW"))
    y = y + bias[None, :, None, None]
    caps = y.reshape(x.shape[0], -1, dim_caps)
    sq = jnp.sum(caps * caps, axis=-1, keepdims=True)
    norm = jnp.sqrt(sq)
    scale = sq / (1.0 + sq) / (norm + 1e-8)
    return scale * caps


# ----------------------------------- main ----------------------------------- #

if __name__ == "__main__":
    # PrimaryCapsule(in_channels=4, out_channels=16, dim_caps=8,
    #                kernel_size=3, stride=2, padding=0)
    B, Cin, H, W = 2, 4, 16, 16
    Cout, dim_caps, ksize, stride, padding = 16, 8, 3, 2, 0

    key = jax.random.PRNGKey(0)
    kx, kw, kb = jax.random.split(key, 3)

    x = jax.random.normal(kx, (B, Cin, H, W), dtype=jnp.float32)
    fan_in = Cin * ksize * ksize
    bound = 1.0 / (fan_in ** 0.5)
    weight = jax.random.uniform(kw, (Cout, Cin, ksize, ksize),
                                minval=-bound, maxval=bound, dtype=jnp.float32)
    bias = jax.random.uniform(kb, (Cout,), minval=-bound, maxval=bound,
                              dtype=jnp.float32)

    fwd_f32 = jax.jit(functools.partial(
        primary_capsule_forward, dim_caps=dim_caps, stride=stride,
        padding=padding, compute_dtype=jnp.float32))
    fwd_bf16 = jax.jit(functools.partial(
        primary_capsule_forward, dim_caps=dim_caps, stride=stride,
        padding=padding, compute_dtype=jnp.bfloat16))

    out_f32 = jax.block_until_ready(fwd_f32(x, weight, bias))
    out_bf16 = jax.block_until_ready(fwd_bf16(x, weight, bias))

    ref = _reference(x, weight, bias, dim_caps, stride, padding)
    Ho = (H - ksize) // stride + 1
    expected = (B, (Cout * Ho * Ho) // dim_caps, dim_caps)
    assert out_f32.shape == expected and out_bf16.shape == expected

    # f32 path: near-exact match to the f32 reference (approx=False recip).
    assert jnp.allclose(out_f32, ref, rtol=1e-4, atol=1e-5), \
        float(jnp.max(jnp.abs(out_f32 - ref)))
    # bf16 MXU path (v5e/v6e/v7x fast path): bf16-level agreement.
    assert jnp.allclose(out_bf16, ref, rtol=3e-2, atol=3e-2), \
        float(jnp.max(jnp.abs(out_bf16 - ref)))

    print("KERNEL_OK")
</pallas_src>

<mosaic_0001>
module attributes {stable_mosaic.version = 11 : i64} {
  func.func @_conv_bias_kernel(%arg0: i32, %arg1: i32, %arg2: memref<16x36xf32, #tpu.memory_space<vmem>>, %arg3: memref<16x1xf32, #tpu.memory_space<vmem>>, %arg4: memref<1x36x128xf32, #tpu.memory_space<vmem>>, %arg5: memref<1x16x128xf32, #tpu.memory_space<vmem>>) attributes {dimension_semantics = [#tpu.dimension_semantics<parallel>, #tpu.dimension_semantics<parallel>], iteration_bounds = array<i64: 2, 1>, scalar_prefetch = 0 : i64, scratch_operands = 0 : i64, tpu.core_type = #tpu.core_type<tc>, window_params = [{pipeline_mode = #tpu.pipeline_mode<synchronous>, transform_indices = @transform_0, window_bounds = array<i64: 16, 36>}, {pipeline_mode = #tpu.pipeline_mode<synchronous>, transform_indices = @transform_1, window_bounds = array<i64: 16, 1>}, {transform_indices = @transform_2, window_bounds = array<i64: 1, 36, 128>}, {transform_indices = @transform_3, window_bounds = array<i64: 1, 16, 128>}]} {
    %c0 = arith.constant 0 : index
    %c0_0 = arith.constant 0 : index
    %0 = vector.load %arg2[%c0, %c0_0] : memref<16x36xf32, #tpu.memory_space<vmem>>, vector<16x36xf32>
    %c0_1 = arith.constant 0 : index
    %c0_2 = arith.constant 0 : index
    %c0_3 = arith.constant 0 : index
    %1 = vector.load %arg4[%c0_1, %c0_2, %c0_3] : memref<1x36x128xf32, #tpu.memory_space<vmem>>, vector<1x36x128xf32>
    %2 = vector.shape_cast %1 : vector<1x36x128xf32> to vector<36x128xf32>
    %cst = arith.constant dense<0.000000e+00> : vector<16x128xf32>
    %3 = tpu.matmul %0, %2, %cst {dimension_numbers = #tpu.dot_dimension_numbers<[1], [0], [0], [1], [0, 0, 1, 1], [], []>} : vector<16x36xf32>, vector<36x128xf32>, vector<16x128xf32> -> vector<16x128xf32>
    %c0_4 = arith.constant 0 : index
    %c0_5 = arith.constant 0 : index
    %4 = vector.load %arg3[%c0_4, %c0_5] : memref<16x1xf32, #tpu.memory_space<vmem>>, vector<16x1xf32>
    %5 = vector.broadcast %4 : vector<16x1xf32> to vector<16x128xf32>
    %6 = arith.addf %3, %5 : vector<16x128xf32>
    %c0_6 = arith.constant 0 : index
    %c0_7 = arith.constant 0 : index
    %c0_8 = arith.constant 0 : index
    %7 = vector.load %arg5[%c0_6, %c0_7, %c0_8] : memref<1x16x128xf32, #tpu.memory_space<vmem>>, vector<1x16x128xf32>
    %8 = vector.shape_cast %7 : vector<1x16x128xf32> to vector<16x128xf32>
    %9 = vector.shape_cast %6 : vector<16x128xf32> to vector<1x16x128xf32>
    tpu.vector_store %arg5[%c0_6, %c0_7, %c0_8], %9 {strides = array<i32>} : memref<1x16x128xf32, #tpu.memory_space<vmem>>, vector<1x16x128xf32>,
    return
  }
  func.func @transform_0(%arg0: i32, %arg1: i32) -> (i32, i32) {
    %c0_i32 = arith.constant 0 : i32
    %c0_i32_0 = arith.constant 0 : i32
    %c0_i32_1 = arith.constant 0 : i32
    return %c0_i32, %c0_i32_0 : i32, i32
  }
  func.func @transform_1(%arg0: i32, %arg1: i32) -> (i32, i32) {
    %c0_i32 = arith.constant 0 : i32
    %c0_i32_0 = arith.constant 0 : i32
    %c0_i32_1 = arith.constant 0 : i32
    return %c0_i32, %c0_i32_0 : i32, i32
  }
  func.func @transform_2(%arg0: i32, %arg1: i32) -> (i32, i32, i32) {
    %c0_i32 = arith.constant 0 : i32
    %c0_i32_0 = arith.constant 0 : i32
    return %arg0, %c0_i32, %arg1 : i32, i32, i32
  }
  func.func @transform_3(%arg0: i32, %arg1: i32) -> (i32, i32, i32) {
    %c0_i32 = arith.constant 0 : i32
    %c0_i32_0 = arith.constant 0 : i32
    return %arg0, %c0_i32, %arg1 : i32, i32, i32
  }
}

module attributes {stable_mosaic.version = 11 : i64} {
  func.func @_squash_kernel(%arg0: i32, %arg1: memref<128x16xf32, #tpu.memory_space<vmem>>, %arg2: memref<16x128xf32, #tpu.memory_space<vmem>>, %arg3: memref<16x128xf32, #tpu.memory_space<vmem>>, %arg4: memref<16x128xf32, #tpu.memory_space<vmem>>) attributes {dimension_semantics = [#tpu.dimension_semantics<parallel>], iteration_bounds = array<i64: 1>, scalar_prefetch = 0 : i64, scratch_operands = 0 : i64, tpu.core_type = #tpu.core_type<tc>, window_params = [{pipeline_mode = #tpu.pipeline_mode<synchronous>, transform_indices = @transform_0, window_bounds = array<i64: 128, 16>}, {pipeline_mode = #tpu.pipeline_mode<synchronous>, transform_indices = @transform_1, window_bounds = array<i64: 16, 128>}, {transform_indices = @transform_2, window_bounds = array<i64: 16, 128>}, {transform_indices = @transform_3, window_bounds = array<i64: 16, 128>}]} {
    %c0 = arith.constant 0 : index
    %c0_0 = arith.constant 0 : index
    %0 = vector.load %arg3[%c0, %c0_0] : memref<16x128xf32, #tpu.memory_space<vmem>>, vector<16x128xf32>
    %1 = arith.mulf %0, %0 : vector<16x128xf32>
    %c0_1 = arith.constant 0 : index
    %c0_2 = arith.constant 0 : index
    %2 = vector.load %arg1[%c0_1, %c0_2] : memref<128x16xf32, #tpu.memory_space<vmem>>, vector<128x16xf32>
    %cst = arith.constant dense<0.000000e+00> : vector<16x16xf32>
    %3 = tpu.matmul %1, %2, %cst {dimension_numbers = #tpu.dot_dimension_numbers<[1], [0], [0], [1], [0, 0, 1, 1], [], []>} : vector<16x128xf32>, vector<128x16xf32>, vector<16x16xf32> -> vector<16x16xf32>
    %4 = math.sqrt %3 : vector<16x16xf32>
    %cst_3 = arith.constant 1.000000e+00 : f32
    %5 = vector.broadcast %cst_3 : f32 to vector<16x16xf32>
    %6 = arith.addf %5, %3 : vector<16x16xf32>
    %cst_4 = arith.constant 9.99999993E-9 : f32
    %7 = vector.broadcast %cst_4 : f32 to vector<16x16xf32>
    %8 = arith.addf %4, %7 : vector<16x16xf32>
    %9 = arith.mulf %6, %8 : vector<16x16xf32>
    %10 = tpu.reciprocal %9 : vector<16x16xf32> -> vector<16x16xf32>
    %11 = arith.mulf %3, %10 : vector<16x16xf32>
    %c0_5 = arith.constant 0 : index
    %c0_6 = arith.constant 0 : index
    %12 = vector.load %arg2[%c0_5, %c0_6] : memref<16x128xf32, #tpu.memory_space<vmem>>, vector<16x128xf32>
    %cst_7 = arith.constant dense<0.000000e+00> : vector<16x128xf32>
    %13 = tpu.matmul %11, %12, %cst_7 {dimension_numbers = #tpu.dot_dimension_numbers<[1], [0], [0], [1], [0, 0, 1, 1], [], []>} : vector<16x16xf32>, vector<16x128xf32>, vector<16x128xf32> -> vector<16x128xf32>
    %14 = arith.mulf %0, %13 : vector<16x128xf32>
    %c0_8 = arith.constant 0 : index
    %c0_9 = arith.constant 0 : index
    %15 = vector.load %arg4[%c0_8, %c0_9] : memref<16x128xf32, #tpu.memory_space<vmem>>, vector<16x128xf32>
    tpu.vector_store %arg4[%c0_8, %c0_9], %14 {strides = array<i32>} : memref<16x128xf32, #tpu.memory_space<vmem>>, vector<16x128xf32>,
    return
  }
  func.func @transform_0(%arg0: i32) -> (i32, i32) {
    %c0_i32 = arith.constant 0 : i32
    %c0_i32_0 = arith.constant 0 : i32
    %c0_i32_1 = arith.constant 0 : i32
    return %c0_i32, %c0_i32_0 : i32, i32
  }
  func.func @transform_1(%arg0: i32) -> (i32, i32) {
    %c0_i32 = arith.constant 0 : i32
    %c0_i32_0 = arith.constant 0 : i32
    %c0_i32_1 = arith.constant 0 : i32
    return %c0_i32, %c0_i32_0 : i32, i32
  }
  func.func @transform_2(%arg0: i32) -> (i32, i32) {
    %c0_i32 = arith.constant 0 : i32
    %c0_i32_0 = arith.constant 0 : i32
    return %arg0, %c0_i32 : i32, i32
  }
  func.func @transform_3(%arg0: i32) -> (i32, i32) {
    %c0_i32 = arith.constant 0 : i32
    %c0_i32_0 = arith.constant 0 : i32
    return %arg0, %c0_i32 : i32, i32
  }
}

</mosaic_0001>

<bundles_post_ra>
// kernel: primary_capsule_forward.2
= control target key start
LH: loop header
LB: loop body
LE: loop exit
PB: predicated region body
PF: predicated region fallthrough
CT: control target
= control target key end

     0   :  { %s498_s12 = smov 0   ;;  %s500_s13 = smov 0   ;;  %s545_s0 = inlined_call_operand.vmem [shape: f32[16,36], index: 0, kind: input, shape index: {}]   ;;  %s546_s1 = inlined_call_operand.vmem [shape: f32[16,1], index: 1, kind: input, shape index: {}]   ;;  %s547_s2 = inlined_call_operand.vmem [shape: f32[2,36,128], index: 2, kind: input, shape index: {}]   ;;  %s548_s3 = inlined_call_operand.vmem [shape: f32[2,16,128], index: 3, kind: output, shape index: {}]  }
   0x1   :  { %s502_s14 = smov 0  }
   0x2 LB: > { %s25_s15 = sadd.s32 1, %s471_s13  ;;  %p396_p0 = scmp.ge.s32.totalorder %s475_s14, 1  ;;  %s475_s14 = sphi %s502_s14, %s13_s14   ;;  %s471_s13 = sphi %s500_s13, %s550_s13   ;;  %s467_s12 = sphi %s498_s12, %s549_s12  }
   0x3   : > { %p27_p1 = scmp.ge.s32.totalorder %s25_s15, 2  ;;  %p156_p2 = scmp.lt.s32.totalorder %s475_s14, 3 }
   0x5   : > { %s552_s15 = smov (%p27_p1, %s25_s15), 0  ;;  %p157_p3 = pnand %p396_p0, %p156_p2 }
   0x6   : > { %p186_p4 = scmp.lt.s32.totalorder (!%p157_p3), %s467_s12, 1 }
   0x7   : > { %160 = sbr.rel (%p157_p3) target bundleno = 225 (0xe1), region = 32 }
   0xc   : > { %v202_v0 = vld [vmem:[%s545_s0] sm:$0xff]  ;;  %vm221_vm0 = vcmask 293888   ;;  %v477_v1 = vmov 0   ;;  %s554_s12 = smov (!%p186_p4, %s467_s12), 1  ;;  %v210_v3 = vld [vmem:[%s546_s1 + $0x8] sm:$0xff]  ;;  %vm228_vm1 = vcmask 1043456  }
   0xd   : > { %423 = vmatprep.mubr.msk.f32.mxu0 %vm221_vm0, %v202_v0  ;;  %452 = vset.pattern.permute.xlu0 %v477_v1  ;;  %v209_v2 = vld [vmem:[%s546_s1] sm:$0xff]  ;;  %s426_s22 = smul.u32 40, %s554_s12  ;;  %v203_v9 = vld [vmem:[%s545_s0 + $0x8] sm:$0xff]  ;;  %s405_s28 = sshll.u32 %s554_s12, 4 }
   0xe   : > { %213 = vperm.xlu0 %452, %v209_v2   ;;  %s201_s4 = scalar_lea.vmem %s548_s3, %s405_s28 }
   0xf   : > { %s193_s25 = scalar_lea.vmem %s547_s2, %s426_s22 }
  0x10   : > { %v208_v4 = vld [vmem:[%s193_s25 + $0x20] sm:$0xf]  ;;  %v207_v5 = vld [vmem:[%s193_s25 + $0x18] sm:$0xff]  ;;  %v206_v6 = vld [vmem:[%s193_s25 + $0x10] sm:$0xff] }
  0x11   : > { %413 = vmatprep.subr.msk.mxu0 %vm228_vm1, %v208_v4  ;;  %v205_v7 = vld [vmem:[%s193_s25 + $0x8] sm:$0xff]  ;;  %v204_v8 = vld [vmem:[%s193_s25] sm:$0xff] }
  0x12   : > { %218 = vperm.xlu0 %452, %v210_v3   ;;  %414 = vmatpush3.msk.msra.mxu0 %vm228_vm1, %v208_v4 }
  0x13   : > { %415 = vmatprep.subr.mxu0 %v207_v5 }
  0x14   : > { %416 = vmatpush3.msra.mxu0 %v207_v5 }
  0x15   : > { %417 = vmatprep.subr.mxu0 %v206_v6 }
  0x16   : > { %418 = vmatpush3.msra.mxu0 %v206_v6 }
  0x17   : > { %419 = vmatprep.subr.mxu0 %v205_v7 }
  0x18   : > { %420 = vmatpush3.msra.mxu0 %v205_v7 }
  0x19   : > { %421 = vmatprep.subr.mxu0 %v204_v8 }
  0x1a   : > { %422 = vmatpush3.msra.mxu0 %v204_v8 }
  0x1b   : > { %424 = vmatmul.mubr.msk.f32.vlgmr.msra.gmra.mxu0 %vm221_vm0, %v203_v9 }
  0x89   : > { %v214_v10 = vpop.permute.xlu0 %213 }
  0x8d   : > { %v219_v11 = vpop.permute.xlu0 %218 }
  0xdb   : > { %v425_v12 = vpop.f32.mrf.mxu0 }
  0xdc   : > { %v304_v13 = vadd.f32 %v425_v12, %v219_v11 }
  0xdd   : > { %v298_v14 = vpop.f32.mrf.mxu0 }
  0xde   : > { %308 = vst [vmem:[%s201_s4 + $0x8] sm:$0xff] %v304_v13  ;;  %v299_v15 = vadd.f32 %v298_v14, %v214_v10 }
  0xe0   : > { %307 = vst [vmem:[%s201_s4] sm:$0xff] %v299_v15 }
  0xe1 PF: > { %s13_s14 = sadd.s32 1, %s475_s14   ;;  %s549_s12 = smov %s471_s13 }
  0xe2   : > { %p10_p5 = scmp.ge.s32.totalorder %s13_s14, 4   ;;  %s550_s13 = smov %s552_s15 }
  0xe4   :  { %12 = sbr.rel (!%p10_p5) target bundleno = 2 (0x2), region = 62 }

// kernel: primary_capsule_forward.3
= control target key start
LH: loop header
LB: loop body
LE: loop exit
PB: predicated region body
PF: predicated region fallthrough
CT: control target
= control target key end

     0   :  { %vm135_vm4 = vcmask 130048   ;;  %s390_s0 = inlined_call_operand.vmem [shape: f32[128,16], index: 0, kind: input, shape index: {}]   ;;  %s391_s2 = inlined_call_operand.vmem [shape: f32[16,128], index: 2, kind: input, shape index: {}]   ;;  %s392_s1 = inlined_call_operand.vmem [shape: f32[16,128], index: 1, kind: input, shape index: {}]   ;;  %s393_s3 = inlined_call_operand.vmem [shape: f32[16,128], index: 3, kind: output, shape index: {}]  }
   0x1   :  { %v33_v0 = vld [vmem:[%s390_s0 + $0x78] sm:$0xff]  ;;  %v32_v1 = vld [vmem:[%s390_s0 + $0x70] sm:$0xff]  ;;  %v31_v2 = vld [vmem:[%s390_s0 + $0x68] sm:$0xff] }
   0x2   :  { %249 = vmatprep.subr.mxu0 %v33_v0  ;;  %v30_v3 = vld [vmem:[%s390_s0 + $0x60] sm:$0xff]  ;;  %v29_v5 = vld [vmem:[%s390_s0 + $0x58] sm:$0xff]  ;;  %v28_v7 = vld [vmem:[%s390_s0 + $0x50] sm:$0xff] }
   0x3   :  { %250 = vmatpush3.msra.mxu0 %v33_v0  ;;  %v334_v4 = vld [vmem:[%s391_s2] sm:$0xff]  ;;  %v27_v8 = vld [vmem:[%s390_s0 + $0x48] sm:$0xff]  ;;  %v25_v10 = vld [vmem:[%s390_s0 + $0x38] sm:$0xff] }
   0x4   :  { %251 = vmatprep.subr.mxu0 %v32_v1  ;;  %v16_v6 = vmul.f32 %v334_v4, %v334_v4  ;;  %v26_v9 = vld [vmem:[%s390_s0 + $0x40] sm:$0xff]  ;;  %v24_v11 = vld [vmem:[%s390_s0 + $0x30] sm:$0xff]  ;;  %v23_v12 = vld [vmem:[%s390_s0 + $0x28] sm:$0xff] }
   0x5   :  { %252 = vmatpush3.msra.mxu0 %v32_v1  ;;  %v22_v13 = vld [vmem:[%s390_s0 + $0x20] sm:$0xff]  ;;  %v21_v14 = vld [vmem:[%s390_s0 + $0x18] sm:$0xff]  ;;  %v20_v15 = vld [vmem:[%s390_s0 + $0x10] sm:$0xff] }
   0x6   :  { %253 = vmatprep.subr.mxu0 %v31_v2  ;;  %281 = vmatprep.mubr.f32.mxu0 %v16_v6  ;;  %v19_v16 = vld [vmem:[%s390_s0 + $0x8] sm:$0xff]  ;;  %v18_v18 = vld [vmem:[%s390_s0] sm:$0xff] }
   0x7   :  { %254 = vmatpush3.msra.mxu0 %v31_v2  ;;  %v15_v17 = vld [vmem:[%s391_s2 + $0x8] sm:$0xff]  ;;  %v133_v21 = vld [vmem:[%s392_s1] sm:$0xff] }
   0x8   :  { %255 = vmatprep.subr.mxu0 %v30_v3  ;;  %v17_v19 = vmul.f32 %v15_v17, %v15_v17  ;;  %v134_v20 = vld [vmem:[%s392_s1 + $0x8] sm:$0xff] }
   0x9   :  { %256 = vmatpush3.msra.mxu0 %v30_v3  ;;  %284 = vmatprep.subr.mxu1 %v134_v20 }
   0xa   :  { %257 = vmatprep.subr.mxu0 %v29_v5  ;;  %285 = vmatpush3.msra.mxu1 %v134_v20 }
   0xb   :  { %258 = vmatpush3.msra.mxu0 %v29_v5  ;;  %286 = vmatprep.subr.mxu1 %v133_v21 }
   0xc   :  { %259 = vmatprep.subr.mxu0 %v28_v7  ;;  %287 = vmatpush3.msra.mxu1 %v133_v21 }
   0xd   :  { %260 = vmatpush3.msra.mxu0 %v28_v7 }
   0xe   :  { %261 = vmatprep.subr.mxu0 %v27_v8 }
   0xf   :  { %262 = vmatpush3.msra.mxu0 %v27_v8 }
  0x10   :  { %263 = vmatprep.subr.mxu0 %v26_v9 }
  0x11   :  { %264 = vmatpush3.msra.mxu0 %v26_v9 }
  0x12   :  { %265 = vmatprep.subr.mxu0 %v25_v10 }
  0x13   :  { %266 = vmatpush3.msra.mxu0 %v25_v10 }
  0x14   :  { %267 = vmatprep.subr.mxu0 %v24_v11 }
  0x15   :  { %268 = vmatpush3.msra.mxu0 %v24_v11 }
  0x16   :  { %269 = vmatprep.subr.mxu0 %v23_v12 }
  0x17   :  { %270 = vmatpush3.msra.mxu0 %v23_v12 }
  0x18   :  { %271 = vmatprep.subr.mxu0 %v22_v13 }
  0x19   :  { %272 = vmatpush3.msra.mxu0 %v22_v13 }
  0x1a   :  { %273 = vmatprep.subr.mxu0 %v21_v14 }
  0x1b   :  { %274 = vmatpush3.msra.mxu0 %v21_v14 }
  0x1c   :  { %275 = vmatprep.subr.mxu0 %v20_v15 }
  0x1d   :  { %276 = vmatpush3.msra.mxu0 %v20_v15 }
  0x1e   :  { %277 = vmatprep.subr.mxu0 %v19_v16 }
  0x1f   :  { %278 = vmatpush3.msra.mxu0 %v19_v16 }
  0x20   :  { %279 = vmatprep.subr.mxu0 %v18_v18 }
  0x21   :  { %280 = vmatpush3.msra.mxu0 %v18_v18 }
  0x22   :  { %282 = vmatmul.mubr.f32.vlgmr.msra.gmra.mxu0 %v17_v19 }
  0xe2   :  { %v283_v22 = vpop.f32.mrf.mxu0 }
  0xe3   :  { %291 = vrsqrt.f32 %v283_v22  ;;  %vm118_vm0 = vcmp.eq.f32.partialorder %v283_v22, inf  ;;  %v121_v27 = vand.u32 2147483648, %v283_v22  ;;  %vm120_vm1 = vcmp.eq.f32.partialorder %v283_v22, 0.0 }
  0xe4   :  { %v100_v23 = vpop.f32.mrf.mxu0  ;;  %v124_v32 = vadd.f32 1.0, %v283_v22 }
  0xe5   :  { %293 = vrsqrt.f32 %v100_v23  ;;  %vm111_vm2 = vcmp.eq.f32.partialorder %v100_v23, inf  ;;  %v114_v31 = vand.u32 2147483648, %v100_v23  ;;  %vm113_vm3 = vcmp.eq.f32.partialorder %v100_v23, 0.0 }
  0xe6   :  { %v123_v37 = vadd.f32 1.0, %v100_v23 }
  0xf0   :  { %v292_v24 = vpop.eup %291 }
  0xf1   :  { %v117_v25 = vmul.f32 %v292_v24, %v283_v22 }
  0xf2   :  { %v294_v26 = vpop.eup %293 }
  0xf3   :  { %v119_v28 = vsel %vm118_vm0, %v283_v22, %v117_v25  ;;  %v110_v29 = vmul.f32 %v294_v26, %v100_v23 }
  0xf4   :  { %v122_v30 = vsel %vm120_vm1, %v121_v27, %v119_v28 }
  0xf5   :  { %v126_v33 = vadd.f32 1e-08, %v122_v30  ;;  %v112_v34 = vsel %vm111_vm2, %v100_v23, %v110_v29 }
  0xf6   :  { %v115_v35 = vsel %vm113_vm3, %v114_v31, %v112_v34 }
  0xf7   :  { %v128_v36 = vmul.f32 %v126_v33, %v124_v32  ;;  %v125_v38 = vadd.f32 1e-08, %v115_v35 }
  0xf9   :  { %v127_v39 = vmul.f32 %v125_v38, %v123_v37  ;;  %295 = vrcp.f32 %v128_v36 }
  0xfb   :  { %297 = vrcp.f32 %v127_v39 }
 0x106   :  { %v296_v40 = vpop.eup %295 }
 0x107   :  { %v132_v43 = vmul.f32 %v296_v40, %v283_v22 }
 0x108   :  { %v298_v41 = vpop.eup %297 }
 0x109   :  { %v131_v42 = vmul.f32 %v298_v41, %v100_v23 }
 0x10b   :  { %288 = vmatprep.mubr.msk.f32.mxu1 %vm135_vm4, %v131_v42 }
 0x10c   :  { %289 = vmatmul.mubr.msk.f32.vlgmr.msra.gmra.mxu1 %vm135_vm4, %v132_v43 }
 0x1cc   :  { %v290_v44 = vpop.f32.mrf.mxu1 }
 0x1cd   :  { %v218_v45 = vmul.f32 %v290_v44, %v15_v17 }
 0x1ce   :  { %v208_v46 = vpop.f32.mrf.mxu1 }
 0x1cf   :  { %220 = vst [vmem:[%s393_s3 + $0x8] sm:$0xff] %v218_v45  ;;  %v217_v47 = vmul.f32 %v208_v46, %v334_v4 }
 0x1d1   :  { %219 = vst [vmem:[%s393_s3] sm:$0xff] %v217_v47 }

</bundles_post_ra>
